<compile_context>
chip_gen: v7x
topology: tpu7x:2x2x1
jax: 0.10.0
libtpu: 0.0.40
codegen_flags: <defaults>
</compile_context>

<pallas_src>
from functools import partial

import jax
import jax.numpy as jnp
from jax.experimental import pallas as pl
from jax.experimental.pallas import tpu as pltpu


def _round_up(a, b):
    return (a + b - 1) // b * b


def _pick_row_tile(n, tm_target):
    """Return (tm, n_pad).  Prefers n_pad == n (no padding, no output slice)."""
    if n <= tm_target:
        return n, n                       # single tile spans the full n axis
    start = tm_target - tm_target % 16    # only 16-multiples (bf16 sublanes)
    for tm in range(start, 0, -16):
        if tm < max(128, tm_target // 4):
            break
        if n % tm == 0:
            return tm, n                  # divisor of n: no padding, no slice
    tm = max(16, start)
    return tm, _round_up(n, tm)


def _patch_embed_kernel(p_ref, w_ref, pos_ref, o_ref):
    # p_ref:   (tm, k_pad)     bf16 patches for one (tile, batch) block
    # w_ref:   (k_pad, hidden) bf16 flattened conv weight (VMEM-resident)
    # pos_ref: (tm, hidden)    bf16 positional embedding + folded bias
    # o_ref:   (tm, hidden)
    acc = jnp.dot(p_ref[...], w_ref[...],
                  preferred_element_type=jnp.float32)        # MXU, f32 accum
    o_ref[...] = (acc + pos_ref[...].astype(jnp.float32)).astype(o_ref.dtype)
    # TODO(synk): dropout_rate=0.0 -> identity; nonzero dropout would need
    # pltpu.prng_seed + pltpu.prng_random_bits masking here.


@partial(jax.jit, static_argnames=("patch_size", "tm_target", "out_dtype"))
def patch_embedding(x, weight, bias, pos_embed, patch_size,
                    tm_target=512, out_dtype=None):
    """x: [B, C, H, W] (NCHW, like the PyTorch module).
    weight: [hidden, C, ph, pw] (PyTorch conv layout); bias: [hidden];
    pos_embed: [1, n_patches, hidden].  Returns [B, n_patches, hidden]."""
    B, C, H, W = x.shape
    ph, pw = patch_size
    hidden = weight.shape[0]
    nh, nw = H // ph, W // pw
    n = nh * nw
    patch_dim = C * ph * pw
    out_dt = x.dtype if out_dtype is None else jnp.dtype(out_dtype)

    # --- tile-size selection ------------------------------------------------
    tm, n_pad = _pick_row_tile(n, tm_target)
    tiles = n_pad // tm

    k128 = _round_up(patch_dim, 128)
    k_pad = k128 if k128 * 8 <= patch_dim * 9 else _round_up(patch_dim, 16)

    # --- glue: im2col in bf16, ordering (c, ph, pw) to match the conv weight.
    # TODO(synk): fuse the patchify into the kernel (memory_space=pl.ANY +
    # manual DMA of contiguous per-patch-row strips) to avoid materializing
    # this intermediate array in HBM.
    xb = x.astype(jnp.bfloat16)
    patches = xb.reshape(B, C, nh, ph, nw, pw)
    patches = patches.transpose(0, 2, 4, 1, 3, 5)      # [B, nh, nw, C, ph, pw]
    patches = patches.reshape(B, n, patch_dim)
    if n_pad != n or k_pad != patch_dim:
        patches = jnp.pad(patches,
                          ((0, 0), (0, n_pad - n), (0, k_pad - patch_dim)))

    w2 = weight.reshape(hidden, patch_dim).T.astype(jnp.bfloat16)  # [K, hidden]
    if k_pad != patch_dim:
        w2 = jnp.pad(w2, ((0, k_pad - patch_dim), (0, 0)))

    # Fold bias into the positional embedding once; store bf16 (halves the
    # largest per-row input stream); the add happens after f32 accumulation.
    pos_pb = (pos_embed.reshape(n, hidden).astype(jnp.float32)
              + bias.reshape(1, hidden).astype(jnp.float32)).astype(jnp.bfloat16)
    if n_pad != n:
        pos_pb = jnp.pad(pos_pb, ((0, n_pad - n), (0, 0)))

    out = pl.pallas_call(
        _patch_embed_kernel,
        out_shape=jax.ShapeDtypeStruct((B, n_pad, hidden), out_dt),
        grid=(tiles, B),                  # batch innermost: pos tile is reused
                                          # (not re-DMA'd) across the batch
        in_specs=[
            pl.BlockSpec((None, tm, k_pad), lambda t, b: (b, t, 0)),
            # Constant index_map -> weight DMA'd once, stays VMEM-resident.
            pl.BlockSpec((k_pad, hidden), lambda t, b: (0, 0)),
            # Depends only on the tile axis -> revisit logic skips the re-DMA
            # while the inner batch axis advances.
            pl.BlockSpec((tm, hidden), lambda t, b: (t, 0)),
        ],
        out_specs=pl.BlockSpec((None, tm, hidden), lambda t, b: (b, t, 0)),
        compiler_params=pltpu.CompilerParams(
            # Both axes independent -> shardable across v7x's two TensorCores
            # (no-op on single-TC v5e/v6e).
            dimension_semantics=("parallel", "parallel"),
            vmem_limit_bytes=32 * 1024 * 1024),   # v5e scoped default is 16 MiB
    )(patches, w2, pos_pb)

    if n_pad != n:
        out = out[:, :n, :]
    return out


if __name__ == "__main__":
    # Small shapes consistent with the module:
    # in_channels=4, img_size=16, patch_size=4, hidden_size=32, batch=2
    B, C, H, W = 2, 4, 16, 16
    ph, pw = 4, 4
    hidden = 32
    n_patches = (H // ph) * (W // pw)

    key = jax.random.PRNGKey(0)
    kx, kw, kp = jax.random.split(key, 3)

    x = jax.random.normal(kx, (B, C, H, W), dtype=jnp.float32)
    # Deterministic synthetic parameters (truncated-normal, std=0.02).
    weight = 0.02 * jax.random.truncated_normal(
        kw, -2.0, 2.0, (hidden, C, ph, pw), dtype=jnp.float32)
    bias = jnp.zeros((hidden,), dtype=jnp.float32)
    pos_embed = 0.02 * jax.random.truncated_normal(
        kp, -2.0, 2.0, (1, n_patches, hidden), dtype=jnp.float32)

    out = patch_embedding(x, weight, bias, pos_embed, (ph, pw))
    out = jax.block_until_ready(out)

    # Plain-JAX f32 reference (conv with kernel==stride is patchify+matmul).
    patches_ref = x.reshape(B, C, H // ph, ph, W // pw, pw)
    patches_ref = patches_ref.transpose(0, 2, 4, 1, 3, 5).reshape(
        B, n_patches, C * ph * pw)
    ref = jnp.einsum("bnp,ph->bnh", patches_ref,
                     weight.reshape(hidden, -1).T) + bias + pos_embed

    assert out.shape == (B, n_patches, hidden), out.shape
    assert out.dtype == x.dtype
    # bf16 matmul operands + bf16 pos table (f32 accumulation) -> loosened tol.
    assert jnp.allclose(out, ref, atol=1e-2, rtol=1e-2), (
        float(jnp.max(jnp.abs(out - ref))))

    print("KERNEL_OK")
</pallas_src>

<mosaic_0001>
module attributes {stable_mosaic.version = 11 : i64} {
  func.func @_patch_embed_kernel(%arg0: i32, %arg1: i32, %arg2: memref<1x16x64xbf16, #tpu.memory_space<vmem>>, %arg3: memref<64x32xbf16, #tpu.memory_space<vmem>>, %arg4: memref<16x32xbf16, #tpu.memory_space<vmem>>, %arg5: memref<1x16x32xf32, #tpu.memory_space<vmem>>) attributes {dimension_semantics = [#tpu.dimension_semantics<parallel>, #tpu.dimension_semantics<parallel>], iteration_bounds = array<i64: 1, 2>, scalar_prefetch = 0 : i64, scratch_operands = 0 : i64, tpu.core_type = #tpu.core_type<tc>, window_params = [{transform_indices = @transform_0, window_bounds = array<i64: 1, 16, 64>}, {pipeline_mode = #tpu.pipeline_mode<synchronous>, transform_indices = @transform_1, window_bounds = array<i64: 64, 32>}, {transform_indices = @transform_2, window_bounds = array<i64: 16, 32>}, {transform_indices = @transform_3, window_bounds = array<i64: 1, 16, 32>}]} {
    %c0 = arith.constant 0 : index
    %c0_0 = arith.constant 0 : index
    %c0_1 = arith.constant 0 : index
    %0 = vector.load %arg2[%c0, %c0_0, %c0_1] : memref<1x16x64xbf16, #tpu.memory_space<vmem>>, vector<1x16x64xbf16>
    %1 = vector.shape_cast %0 : vector<1x16x64xbf16> to vector<16x64xbf16>
    %c0_2 = arith.constant 0 : index
    %c0_3 = arith.constant 0 : index
    %2 = vector.load %arg3[%c0_2, %c0_3] : memref<64x32xbf16, #tpu.memory_space<vmem>>, vector<64x32xbf16>
    %cst = arith.constant dense<0.000000e+00> : vector<16x32xf32>
    %3 = tpu.matmul %1, %2, %cst {dimension_numbers = #tpu.dot_dimension_numbers<[1], [0], [0], [1], [0, 0, 1, 1], [], []>} : vector<16x64xbf16>, vector<64x32xbf16>, vector<16x32xf32> -> vector<16x32xf32>
    %c0_4 = arith.constant 0 : index
    %c0_5 = arith.constant 0 : index
    %4 = vector.load %arg4[%c0_4, %c0_5] : memref<16x32xbf16, #tpu.memory_space<vmem>>, vector<16x32xbf16>
    %5 = arith.extf %4 : vector<16x32xbf16> to vector<16x32xf32>
    %6 = arith.addf %3, %5 : vector<16x32xf32>
    %c0_6 = arith.constant 0 : index
    %c0_7 = arith.constant 0 : index
    %c0_8 = arith.constant 0 : index
    %7 = vector.load %arg5[%c0_6, %c0_7, %c0_8] : memref<1x16x32xf32, #tpu.memory_space<vmem>>, vector<1x16x32xf32>
    %8 = vector.shape_cast %7 : vector<1x16x32xf32> to vector<16x32xf32>
    %9 = vector.shape_cast %6 : vector<16x32xf32> to vector<1x16x32xf32>
    tpu.vector_store %arg5[%c0_6, %c0_7, %c0_8], %9 {strides = array<i32>} : memref<1x16x32xf32, #tpu.memory_space<vmem>>, vector<1x16x32xf32>,
    return
  }
  func.func @transform_0(%arg0: i32, %arg1: i32) -> (i32, i32, i32) {
    %c0_i32 = arith.constant 0 : i32
    %c0_i32_0 = arith.constant 0 : i32
    return %arg1, %arg0, %c0_i32 : i32, i32, i32
  }
  func.func @transform_1(%arg0: i32, %arg1: i32) -> (i32, i32) {
    %c0_i32 = arith.constant 0 : i32
    %c0_i32_0 = arith.constant 0 : i32
    %c0_i32_1 = arith.constant 0 : i32
    return %c0_i32, %c0_i32_0 : i32, i32
  }
  func.func @transform_2(%arg0: i32, %arg1: i32) -> (i32, i32) {
    %c0_i32 = arith.constant 0 : i32
    %c0_i32_0 = arith.constant 0 : i32
    return %arg0, %c0_i32 : i32, i32
  }
  func.func @transform_3(%arg0: i32, %arg1: i32) -> (i32, i32, i32) {
    %c0_i32 = arith.constant 0 : i32
    %c0_i32_0 = arith.constant 0 : i32
    return %arg1, %arg0, %c0_i32 : i32, i32, i32
  }
}

</mosaic_0001>

<bundles_post_ra>
// kernel: patch_embedding.1
= control target key start
LH: loop header
LB: loop body
LE: loop exit
PB: predicated region body
PF: predicated region fallthrough
CT: control target
= control target key end

     0   :  { %8 = vsyncpa [#allocation3], 0  ;;  %s766_s0 = inlined_call_operand.vmem [shape: bf16[2,16,64], index: 0, kind: input, shape index: {}]   ;;  %s767_s1 = inlined_call_operand.vmem [shape: bf16[64,32], index: 1, kind: input, shape index: {}]   ;;  %s768_s2 = inlined_call_operand.vmem [shape: bf16[16,32], index: 2, kind: input, shape index: {}]   ;;  %s769_s3 = inlined_call_operand.hbm [shape: f32[2,16,32], index: 3, kind: output, shape index: {}]  }
   0x1   :  { %10 = vsyncpa [#allocation3 + $0x1], 0  ;;  %s636_s12 = smov 0   ;;  %s638_s13 = smov 0  }
   0x2   :  { %s640_s14 = smov 0   ;;  %s642_s15 = smov 0  }
   0x3   :  { %s644_s16 = smov 0   ;;  %s646_s17 = smov 0  }
   0x4 LB: > { %s424_s18 = sadd.s32 4294967295, %s609_s17   ;;  %s425_s19 = sadd.s32 4294967294, %s609_s17   ;;  %s609_s17 = sphi %s646_s17, %s16_s17   ;;  %s605_s16 = sphi %s644_s16, %s776_s16   ;;  %s601_s15 = sphi %s642_s15, %s775_s15   ;;  %s597_s14 = sphi %s640_s14, %s774_s14   ;;  %s593_s13 = sphi %s638_s13, %s773_s13   ;;  %s589_s12 = sphi %s636_s12, %s772_s12  }
   0x5   : > { %s25_s20 = sadd.s32 1, %s605_s16  ;;  %s112_s21 = sadd.s32 1, %s597_s14 }
   0x6   : > { %p26_p0 = scmp.ge.s32.totalorder %s25_s20, 2  ;;  %p122_p1 = scmp.ne.s32.totalorder %s597_s14, %s593_s13 }
   0x7   : > { %p123_p2 = scmp.eq.s32.totalorder %s424_s18, 1  ;;  %p128_p3 = scmp.ne.s32.totalorder %s593_s13, %s589_s12 }
   0x8   : > { %s778_s20 = smov (%p26_p0, %s25_s20), 0  ;;  %p129_p5 = scmp.eq.s32.totalorder %s425_s19, 1 }
   0x9   : > { %p676_p4 = por %p123_p2, %p122_p1  ;;  %s107_s23 = ssub.s32 %s605_s16, %s778_s20 }
   0xa   : > { %p429_p6 = scmp.ge.s32.totalorder %s609_s17, 1  ;;  %p110_p7 = scmp.eq.s32.totalorder %s107_s23, 0 }
   0xb   : > { %p683_p8 = por %p129_p5, %p128_p3  ;;  %p172_p9 = scmp.lt.s32.totalorder %s609_s17, 3 }
   0xc   : > { %s689_s25 = scalar_select %p110_p7, %s597_s14, %s112_s21  }
   0xd   : > { %p173_p10 = pnand %p429_p6, %p172_p9 }
   0xe   : > { %v526_v0 = vld [vmem:[%s767_s1] sm:$0xff] (!%p173_p10)   ;;  %v611_v1 = vmov (!%p173_p10), 0.0   ;;  %v527_v2 = vld [vmem:[%s767_s1 + $0x8] sm:$0xff] (!%p173_p10)   ;;  %vm612_vm0 = vmmov (!%p173_p10), 0   ;;  %p206_p11 = scmp.lt.s32.totalorder (!%p173_p10), %s601_s15, 1  ;;  %v528_v3 = vld [vmem:[%s767_s1 + $0x10] sm:$0xff] (!%p173_p10)  }
   0xf   : > { %176 = sbr.rel (%p173_p10) target bundleno = 262 (0x106), region = 32  ;;  %455 = vmatprep.subr.bf16.mxu0 (!%p173_p10), %v611_v1  ;;  %463 = vmatprep.mubr.msk.bf16.mxu0 (!%p173_p10), %vm612_vm0, %v611_v1  ;;  %v529_v4 = vld [vmem:[%s767_s1 + $0x18] sm:$0xff] (!%p173_p10)   ;;  %vm266_vm1 = vcmask (!%p173_p10), 523264   ;;  %s202_s18 = sand.u32 (!%p173_p10), 1, %s593_s13   ;;  %v447_v6 = vld [vmem:[%s768_s2] sm:$0xff] (!%p173_p10)   ;;  %vm311_vm2 = vcmask (!%p173_p10), 261120  }
  0x10   : > { %456 = vmatpush3.bf16.msra.mxu0 (!%p173_p10), %v526_v0  ;;  %s430_s19 = sshll.u32 (!%p173_p10), %s202_s18, 4  ;;  %v448_v7 = vunpack.c.l.bf16 (!%p173_p10), %v447_v6  ;;  %v449_v8 = vunpack.c.h.bf16 (!%p173_p10), %v447_v6  ;;  %s445_s28 = sshll.u32 (!%p173_p10), %s601_s15, 8 }
  0x11   : > { %457 = vmatprep.subr.bf16.mxu0 (!%p173_p10), %v611_v1  ;;  %s204_s26 = scalar_lea.vmem (!%p173_p10), [#allocation2], %s430_s19  ;;  %s718_s4 = scalar_lea.hbm (!%p173_p10), %s769_s3, %s445_s28 }
  0x12   : > { %s330_s27 = sshll.u32 (!%p173_p10), %s204_s26, 4  ;;  %s713_s27 = int_to_ptr.vmem [resolvable:$true] %s330_s27 }
  0x13   : > { %s531_s5 = scalar_lea.vmem (!%p173_p10), %s713_s27, 256 }
  0x14   : > { %458 = vmatpush3.bf16.msra.mxu0 (!%p173_p10), %v527_v2  ;;  %p532_p12 = scmp.ne.s32.totalorder (!%p173_p10), %s713_s27, %s531_s5 }
  0x15   : > { %459 = vmatprep.subr.bf16.mxu0 (!%p173_p10), %v611_v1 }
  0x16   : > { %s207_s30 = scalar_select %p206_p11, %s601_s15, 1 }
  0x17   : > { %s720_s15 = scalar_lea.sflag [#allocation3], %s202_s18  ;;  %p533_p13 = pnand %p532_p12, %p676_p4 }
  0x18   : > { %s444_s6 = sshll.u32 %s207_s30, 3  ;;  %460 = vmatpush3.bf16.msra.mxu0 %v528_v3 }
  0x19   : > { %s213_s9 = scalar_lea.vmem %s766_s0, %s444_s6  ;;  %461 = vmatprep.subr.bf16.mxu0 %v611_v1  ;;  %p534_p0 = pneg %p533_p13 }
  0x1a   : > { %v530_v5 = vld [vmem:[%s213_s9] sm:$0xff]   ;;  %s613_s6 = smov [#allocation2]  }
  0x1b   : > { %s535_s7 = sshll.u32 %s613_s6, 4  ;;  %s536_s7 = int_to_ptr.vmem [resolvable:$false] %s535_s7 }
  0x1c   : > { %462 = vmatpush3.bf16.msra.mxu0 %v529_v4  ;;  %s537_s8 = scalar_lea.vmem %s536_s7, 512  ;;  %p538_p1 = scmp.lt.s32.totalorder %s713_s27, %s536_s7 }
  0x1d   : > { %p539_p2 = scmp.lt.s32.totalorder %s537_s8, %s531_s5 }
  0x1f   : > { %464 = vmatmul.mubr.msk.bf16.vlgmr.msra.gmra.mrb[0].mxu0 %vm266_vm1, %v530_v5  ;;  %p540_p3 = por %p539_p2, %p538_p1 }
  0x21   : > { %p541_p5 = pnand %p540_p3, %p534_p0 }
  0xf2   : > { %v304_v9 = vpop.f32.mrb[0].mxu0 }
  0xf3   : > { %v305_v10 = vadd.f32 %v448_v7, %v304_v9  ;;  %v465_v11 = vpop.f32.mrb[1].mxu0 }
  0xf4   : > { %v307_v12 = vpop.f32.mrb[2].mxu0 }
  0xf5   : > { %312 = vst.msk [vmem:[%s204_s26] sm:$0xff] %vm311_vm2, %v305_v10  ;;  %v308_v13 = vadd.f32 %v449_v8, %v307_v12  ;;  %v466_v14 = vpop.f32.mrb[3].mxu0 }
  0xf7   : > { %313 = vst.msk [vmem:[%s204_s26 + $0x8] sm:$0xff] %vm311_vm2, %v308_v13 }
  0xf8   : > { %544 = shalt.err (!%p541_p5)
}
  0xf9   : > { %s545_s9 = scalar_lea.hbm %s718_s4, 256  ;;  %s549_s18 = scalar_lea.hbm %s769_s3, 512 }
  0xfa   : > { %p546_p6 = scmp.ne.s32.totalorder %s718_s4, %s545_s9  ;;  %p550_p10 = scmp.lt.u32.totalorder %s718_s4, %s769_s3 }
  0xfb   : > { %p551_p11 = scmp.lt.u32.totalorder %s549_s18, %s545_s9  ;;  %p553_p13 = scmp.lt.u32.totalorder %s545_s9, %s718_s4 }
  0xfc   : > { %p547_p7 = pnand %p546_p6, %p676_p4 }
  0xfd   : > { %p552_p12 = por %p551_p11, %p550_p10 }
  0xfe   : > { %p548_p9 = pneg %p547_p7 }
  0xff   : > { %p554_p0 = por %p553_p13, %p552_p12 }
 0x101   : > { %p555_p1 = pnand %p554_p0, %p548_p9 }
 0x103   : > { %558 = shalt.err (!%p555_p1)
}
 0x104   : > { %s614_s23 = smov 128   ;;  %s615_s26 = smov 8  }
 0x105   : > { %467 = dma.vmem_to_hbm [thread:$0]  (%p676_p4), %s713_s27, 256, %s718_s4, %s720_s15, %s614_s23, %s614_s23, %s615_s26  }
 0x106 PF: > { %p473_p2 = scmp.ge.s32.totalorder %s609_s17, 2  ;;  %s345_s28 = sand.u32 1, %s589_s12  }
 0x107   : > { %s346_s29 = scalar_lea.sflag [#allocation3], %s345_s28 }
 0x108   : > { %p470_p3 = pnand %p473_p2, %p683_p8 }
 0x10a   : > { %584 = dma.done.wait (!%p470_p3), %s346_s29, 256  }
 0x10b   : > { %586 = vsyncadd (!%p470_p3), %s346_s29, 4294967040  ;;  %s16_s17 = sadd.s32 1, %s609_s17   ;;  %s772_s12 = smov %s593_s13 }
 0x10c   : > { %p13_p5 = scmp.ge.s32.totalorder %s16_s17, 4   ;;  %s773_s13 = smov %s597_s14 }
 0x10d   : > { %s774_s14 = smov %s689_s25  ;;  %s775_s15 = smov %s605_s16 }
 0x10e   : > { %s776_s16 = smov %s778_s20  ;;  %15 = sbr.rel (!%p13_p5) target bundleno = 4 (0x4), region = 70 }
 0x115   :  { %351 = vsyncpa [#allocation3], 1 }
 0x116   :  { %353 = vsyncpa [#allocation3 + $0x1], 1 }

</bundles_post_ra>
